<compile_context>
chip_gen: v5e
topology: v5e:2x2
jax: 0.10.0
libtpu: 0.0.40
codegen_flags: <defaults>
</compile_context>

<pallas_src>
import math

import jax
import jax.numpy as jnp
from jax import lax
from jax.experimental import pallas as pl
from jax.experimental.pallas import tpu as pltpu


# ----------------------------- Pallas kernels ------------------------------ #

def _make_sparsity_kernel(L_K):
    """Kernel 1: M[l] = max_{sampled k} <Q_l,K_k> - (1/L_K) * sum_{sampled k, with dup} <Q_l,K_k>.

    Uses a full Q@K^T tile on the MXU (bf16 x bf16 -> f32) plus a duplicate-count matrix
    instead of an HBM-materialized K_sample gather."""
    inv_lk = 1.0 / float(L_K)

    def kernel(q_ref, k_ref, cnt_ref, m_ref):
        q = q_ref[...]                                    # (G, TQ, D)   bf16
        k = k_ref[...]                                    # (G, L_K, D)  bf16
        cnt = cnt_ref[...].astype(jnp.float32)            # (TQ, L_K)    duplicate counts
        qk = jnp.einsum('gqd,gkd->gqk', q, k,
                        preferred_element_type=jnp.float32)            # (G, TQ, L_K) f32
        present = cnt > 0.0                                             # sampled at least once
        mx = jnp.max(jnp.where(present[None], qk, -jnp.inf),
                     axis=-1, keepdims=True)                            # (G, TQ, 1)
        sm = jnp.sum(qk * cnt[None], axis=-1, keepdims=True)            # dup-weighted sum
        m_ref[...] = mx - sm * inv_lk
    return kernel


def _make_context_kernel(G, L_Q, L_K, n_top, D, scale, mask_flag, T):
    """Kernel 2: top-query attention (ProbMask + softmax + attn@V), initial context
    (cumsum(V) realised as a blocked tril matmul with a running prefix), and scatter of the
    updated rows into the context via a one-hot matmul."""

    def kernel(q_ref, k_ref, v_ref, idxc_ref, idxr_ref, tril_ref, o_ref):
        q = q_ref[...]                                    # (G, n_top, D) bf16
        k = k_ref[...]                                    # (G, L_K, D)   bf16
        v = v_ref[...]                                    # (G, L_K, D)   bf16
        idx_c = idxc_ref[...]                             # (G, n_top, 1) int32 (selected q pos)
        idx_r = idxr_ref[...]                             # (G, 1, n_top) int32

        # scores_top = Q_reduce @ K^T * scale   (bf16 MXU, f32 accumulation)
        scores = jnp.einsum('gud,gkd->guk', q, k,
                            preferred_element_type=jnp.float32) * scale
        if mask_flag:
            # ProbMask: causal mask relative to each selected query position
            kpos = lax.broadcasted_iota(jnp.int32, (G, n_top, L_K), 2)
            scores = jnp.where(kpos > idx_c, -jnp.inf, scores)

        # softmax over keys in f32; the divide goes to the EUP via the approximate reciprocal
        m = jnp.max(scores, axis=-1, keepdims=True)
        p = jnp.exp(scores - m)
        denom = jnp.sum(p, axis=-1, keepdims=True)
        attn = (p * pl.reciprocal(denom, approx=True)).astype(jnp.bfloat16)
        ctx_upd = jnp.einsum('guk,gkd->gud', attn, v,
                             preferred_element_type=jnp.float32)        # (G, n_top, D)

        # scatter ctx_upd into the selected query rows via a one-hot matmul
        row = lax.broadcasted_iota(jnp.int32, (G, L_Q, n_top), 1)
        onehot = (row == idx_r)
        scattered = jnp.einsum('glu,gud->gld', onehot.astype(jnp.bfloat16),
                               ctx_upd.astype(jnp.bfloat16),
                               preferred_element_type=jnp.float32)      # (G, L_Q, D)
        sel = jnp.sum(onehot.astype(jnp.float32), axis=-1, keepdims=True)  # (G, L_Q, 1)

        if mask_flag:
            # initial context = cumsum(V) along keys: blocked tril matmul + running prefix,
            # O(L*T*D) FLOPs and O(T^2) VMEM instead of the old O(L^2) tril.
            trilf = tril_ref[...]                          # (T, T) bf16, resident across grid
            prefix = jnp.zeros((G, 1, D), jnp.float32)
            for lo in range(0, L_Q, T):
                tt = min(T, L_Q - lo)
                vblk = v[:, lo:lo + tt, :]
                trilb = jnp.broadcast_to(trilf[:tt, :tt][None], (G, tt, tt))
                ctx0 = jnp.einsum('gtk,gkd->gtd', trilb, vblk,
                                  preferred_element_type=jnp.float32) + prefix
                prefix = prefix + jnp.sum(vblk.astype(jnp.float32), axis=1, keepdims=True)
                o_ref[:, lo:lo + tt, :] = jnp.where(sel[:, lo:lo + tt, :] > 0,
                                                    scattered[:, lo:lo + tt, :], ctx0)
        else:
            ctx0 = jnp.broadcast_to(
                jnp.mean(v.astype(jnp.float32), axis=1, keepdims=True), (G, L_Q, D))
            o_ref[...] = jnp.where(sel > 0, scattered, ctx0)
    return kernel


# ------------------------------ JAX wrapper -------------------------------- #

def _pick_group(bh):
    # batch a few (batch, head) pairs per grid step (fatter DMAs / fuller MXU), but keep the
    # grid length >= 2 so the grid can shard across v7x's two TensorCores.
    for g in (4, 2, 1):
        if bh % g == 0 and bh // g >= 2:
            return g
    return 1


def prob_attention(queries, keys, values, index_sample, *,
                   factor=5, scale=None, mask_flag=True):
    """ProbAttention.forward. Inputs are (B, L, H, D); returns ((B, H, L_Q, D) f32, None)."""
    B, L_Q, H, D = queries.shape
    _, L_K, _, _ = keys.shape
    BH = B * H

    U_part = min(factor * int(math.ceil(math.log(L_K))), L_K)
    n_top = min(factor * int(math.ceil(math.log(L_Q))), L_Q)
    assert index_sample.shape == (L_Q, U_part)
    scale_v = float(scale) if scale is not None else 1.0 / math.sqrt(D)
    if mask_flag:
        assert L_Q == L_K

    # (B, L, H, D) -> (B*H, L, D); bf16 in HBM halves DMA traffic and is what the MXU wants.
    Q = jnp.transpose(queries, (0, 2, 1, 3)).reshape(BH, L_Q, D).astype(jnp.bfloat16)
    K = jnp.transpose(keys, (0, 2, 1, 3)).reshape(BH, L_K, D).astype(jnp.bfloat16)
    V = jnp.transpose(values, (0, 2, 1, 3)).reshape(BH, L_K, D).astype(jnp.bfloat16)

    G = _pick_group(BH)
    TQ = min(L_Q, 256)
    n_qt = (L_Q + TQ - 1) // TQ

    # Duplicate-count matrix of the random key sampling, shared across all (B, H).
    # Counts are integers <= U_part < 256, hence exactly representable in bf16.
    counts = (jnp.zeros((L_Q, L_K), jnp.float32)
              .at[jnp.arange(L_Q)[:, None], index_sample].add(1.0)
              .astype(jnp.bfloat16))

    vmem_cap = 64 * 1024 * 1024   # sized against v7x's 64 MiB VMEM; raises v5e/v6e 16/32 MiB default

    # Kernel 1: sparsity measure M (inner grid axis = head groups -> `counts` stays resident).
    M = pl.pallas_call(
        _make_sparsity_kernel(L_K),
        out_shape=jax.ShapeDtypeStruct((BH, L_Q, 1), jnp.float32),
        grid=(n_qt, BH // G),
        in_specs=[
            pl.BlockSpec((G, TQ, D), lambda qi, bg: (bg, qi, 0)),
            pl.BlockSpec((G, L_K, D), lambda qi, bg: (bg, 0, 0)),
            pl.BlockSpec((TQ, L_K), lambda qi, bg: (qi, 0)),
        ],
        out_specs=pl.BlockSpec((G, TQ, 1), lambda qi, bg: (bg, qi, 0)),
        compiler_params=pltpu.CompilerParams(
            dimension_semantics=("parallel", "parallel"),
            vmem_limit_bytes=vmem_cap),
    )(Q, K, counts)[..., 0]                                           # (BH, L_Q)

    # glue: top-u query selection + gathers (data-dependent indexing stays in XLA)
    _, M_top = lax.top_k(M, n_top)                                    # (BH, n_top)
    M_top = M_top.astype(jnp.int32)
    Q_reduce = jnp.take_along_axis(Q, M_top[..., None], axis=1)       # (BH, n_top, D) bf16
    idx_col = M_top[..., None]                                        # (BH, n_top, 1)
    idx_row = M_top[:, None, :]                                       # (BH, 1, n_top)

    T = min(L_Q, 256)
    tril = (jnp.arange(T)[:, None] >= jnp.arange(T)[None, :]).astype(jnp.bfloat16)

    # Kernel 2: top-query attention + cumsum(V) context init + scatter.
    context = pl.pallas_call(
        _make_context_kernel(G, L_Q, L_K, n_top, D, scale_v, mask_flag, T),
        out_shape=jax.ShapeDtypeStruct((BH, L_Q, D), jnp.float32),
        grid=(BH // G,),
        in_specs=[
            pl.BlockSpec((G, n_top, D), lambda bg: (bg, 0, 0)),
            pl.BlockSpec((G, L_K, D), lambda bg: (bg, 0, 0)),
            pl.BlockSpec((G, L_K, D), lambda bg: (bg, 0, 0)),
            pl.BlockSpec((G, n_top, 1), lambda bg: (bg, 0, 0)),
            pl.BlockSpec((G, 1, n_top), lambda bg: (bg, 0, 0)),
            pl.BlockSpec((T, T), lambda bg: (0, 0)),                  # resident constant
        ],
        out_specs=pl.BlockSpec((G, L_Q, D), lambda bg: (bg, 0, 0)),
        compiler_params=pltpu.CompilerParams(
            dimension_semantics=("parallel",),
            vmem_limit_bytes=vmem_cap),
    )(Q_reduce, K, V, idx_col, idx_row, tril)

    context = context.reshape(B, H, L_Q, D)
    # nn.Dropout is defined in __init__ but never applied in forward; output_attention=False.
    # TODO(synk): output_attention=True branch (uniform attn matrix + scatter) not implemented.
    return context, None


# -------------------------- pure-JAX reference ------------------------------ #

def prob_attention_ref(queries, keys, values, index_sample, *,
                       factor=5, scale=None, mask_flag=True):
    B, L_Q, H, D = queries.shape
    _, L_K, _, _ = keys.shape
    Q = jnp.transpose(queries, (0, 2, 1, 3))
    K = jnp.transpose(keys, (0, 2, 1, 3))
    V = jnp.transpose(values, (0, 2, 1, 3))
    n_top = min(factor * int(math.ceil(math.log(L_Q))), L_Q)
    scale_v = float(scale) if scale is not None else 1.0 / math.sqrt(D)

    K_sample = K[:, :, index_sample, :]                               # (B,H,L_Q,S,D)
    Q_K_sample = jnp.einsum('bhld,bhlsd->bhls', Q, K_sample)
    M = Q_K_sample.max(-1) - Q_K_sample.sum(-1) / L_K
    _, M_top = lax.top_k(M, n_top)                                    # (B,H,u)
    Q_reduce = jnp.take_along_axis(Q, M_top[..., None], axis=2)
    scores = jnp.einsum('bhud,bhkd->bhuk', Q_reduce, K) * scale_v
    if mask_flag:
        kpos = jnp.arange(L_K)
        mask = kpos[None, None, None, :] > M_top[..., None]
        scores = jnp.where(mask, -jnp.inf, scores)
        ctx0 = jnp.cumsum(V, axis=2)
    else:
        ctx0 = jnp.broadcast_to(jnp.mean(V, axis=2, keepdims=True), (B, H, L_Q, D))
    attn = jax.nn.softmax(scores, axis=-1)
    ctx_upd = jnp.einsum('bhuk,bhkd->bhud', attn, V)
    b_idx = jnp.arange(B)[:, None, None]
    h_idx = jnp.arange(H)[None, :, None]
    return ctx0.at[b_idx, h_idx, M_top].set(ctx_upd)


if __name__ == "__main__":
    B, L, H, D = 2, 24, 2, 32
    factor = 5
    key = jax.random.PRNGKey(0)
    kq, kk, kv, ks = jax.random.split(key, 4)

    # bf16-quantized f32 inputs: the kernels feed the MXU with bf16 operands (f32 accumulation),
    # so quantizing the test data makes the in-kernel bf16 casts lossless and keeps the f32
    # reference a tight golden (top-k query selection then matches exactly).
    def _q(x):
        return x.astype(jnp.bfloat16).astype(jnp.float32)

    queries = _q(jax.random.normal(kq, (B, L, H, D), jnp.float32))
    keys_arr = _q(jax.random.normal(kk, (B, L, H, D), jnp.float32))
    values = _q(jax.random.normal(kv, (B, L, H, D), jnp.float32))

    U_part = min(factor * int(math.ceil(math.log(L))), L)
    # torch.randint(L_K, (L_Q, sample_k)) reproduced (deterministically) with jax.random
    index_sample = jax.random.randint(ks, (L, U_part), 0, L, dtype=jnp.int32)

    context, attn = prob_attention(queries, keys_arr, values, index_sample, factor=factor)
    context = jax.block_until_ready(context)

    ref = prob_attention_ref(queries, keys_arr, values, index_sample, factor=factor)
    assert context.shape == (B, H, L, D)
    assert attn is None
    assert bool(jnp.allclose(context, ref, atol=3e-2, rtol=3e-2)), \
        ("max abs diff", float(jnp.max(jnp.abs(context - ref))))
    print("KERNEL_OK")
</pallas_src>

<mosaic_0001>
module attributes {stable_mosaic.version = 11 : i64} {
  func.func @kernel(%arg0: i32, %arg1: i32, %arg2: memref<2x24x32xbf16, #tpu.memory_space<vmem>>, %arg3: memref<2x24x32xbf16, #tpu.memory_space<vmem>>, %arg4: memref<24x24xbf16, #tpu.memory_space<vmem>>, %arg5: memref<2x24x1xf32, #tpu.memory_space<vmem>>) attributes {dimension_semantics = [#tpu.dimension_semantics<parallel>, #tpu.dimension_semantics<parallel>], iteration_bounds = array<i64: 1, 2>, scalar_prefetch = 0 : i64, scratch_operands = 0 : i64, tpu.core_type = #tpu.core_type<tc>, window_params = [{transform_indices = @transform_0, window_bounds = array<i64: 2, 24, 32>}, {transform_indices = @transform_1, window_bounds = array<i64: 2, 24, 32>}, {transform_indices = @transform_2, window_bounds = array<i64: 24, 24>}, {transform_indices = @transform_3, window_bounds = array<i64: 2, 24, 1>}]} {
    %c0 = arith.constant 0 : index
    %c0_0 = arith.constant 0 : index
    %c0_1 = arith.constant 0 : index
    %0 = vector.load %arg2[%c0, %c0_0, %c0_1] : memref<2x24x32xbf16, #tpu.memory_space<vmem>>, vector<2x24x32xbf16>
    %c0_2 = arith.constant 0 : index
    %c0_3 = arith.constant 0 : index
    %c0_4 = arith.constant 0 : index
    %1 = vector.load %arg3[%c0_2, %c0_3, %c0_4] : memref<2x24x32xbf16, #tpu.memory_space<vmem>>, vector<2x24x32xbf16>
    %c0_5 = arith.constant 0 : index
    %c0_6 = arith.constant 0 : index
    %2 = vector.load %arg4[%c0_5, %c0_6] : memref<24x24xbf16, #tpu.memory_space<vmem>>, vector<24x24xbf16>
    %3 = arith.extf %2 : vector<24x24xbf16> to vector<24x24xf32>
    "tpu.trace_start"() <{level = 10 : i32, message = "gqd,gkd->gqk"}> : () -> ()
    %cst = arith.constant dense<0.000000e+00> : vector<2x24x24xf32>
    %4 = tpu.matmul %0, %1, %cst {dimension_numbers = #tpu.dot_dimension_numbers<[2], [2], [1], [1], [0, 0, 0, 1, 1, 1], [0], [0]>} : vector<2x24x32xbf16>, vector<2x24x32xbf16>, vector<2x24x24xf32> -> vector<2x24x24xf32>
    %cst_7 = arith.constant 0.000000e+00 : f32
    "tpu.trace_stop"() : () -> ()
    %5 = vector.broadcast %cst_7 : f32 to vector<24x24xf32>
    %6 = arith.cmpf ogt, %3, %5 : vector<24x24xf32>
    %7 = vector.shape_cast %6 : vector<24x24xi1> to vector<1x24x24xi1>
    %cst_8 = arith.constant 0xFF800000 : f32
    %8 = vector.shape_cast %7 : vector<1x24x24xi1> to vector<1x24x24xi1>
    %9 = vector.broadcast %8 : vector<1x24x24xi1> to vector<2x24x24xi1>
    %10 = vector.broadcast %cst_8 : f32 to vector<2x24x24xf32>
    %11 = arith.select %9, %4, %10 : vector<2x24x24xi1>, vector<2x24x24xf32>
    %cst_9 = arith.constant dense<0xFF800000> : vector<2x24xf32>
    %12 = vector.multi_reduction <maximumf>, %11, %cst_9 [2] : vector<2x24x24xf32> to vector<2x24xf32>
    %13 = vector.shape_cast %12 : vector<2x24xf32> to vector<2x24x1xf32>
    %14 = vector.shape_cast %3 : vector<24x24xf32> to vector<1x24x24xf32>
    %15 = vector.broadcast %14 : vector<1x24x24xf32> to vector<2x24x24xf32>
    %16 = arith.mulf %4, %15 : vector<2x24x24xf32>
    %cst_10 = arith.constant dense<0.000000e+00> : vector<2x24xf32>
    %17 = vector.multi_reduction <add>, %16, %cst_10 [2] : vector<2x24x24xf32> to vector<2x24xf32>
    %18 = vector.shape_cast %17 : vector<2x24xf32> to vector<2x24x1xf32>
    %cst_11 = arith.constant 0.0416666679 : f32
    %19 = vector.broadcast %cst_11 : f32 to vector<2x24x1xf32>
    %20 = arith.mulf %18, %19 : vector<2x24x1xf32>
    %21 = arith.subf %13, %20 : vector<2x24x1xf32>
    %c0_12 = arith.constant 0 : index
    %c0_13 = arith.constant 0 : index
    %c0_14 = arith.constant 0 : index
    %22 = vector.load %arg5[%c0_12, %c0_13, %c0_14] : memref<2x24x1xf32, #tpu.memory_space<vmem>>, vector<2x24x1xf32>
    tpu.vector_store %arg5[%c0_12, %c0_13, %c0_14], %21 {strides = array<i32>} : memref<2x24x1xf32, #tpu.memory_space<vmem>>, vector<2x24x1xf32>,
    return
  }
  func.func @transform_0(%arg0: i32, %arg1: i32) -> (i32, i32, i32) {
    %c0_i32 = arith.constant 0 : i32
    %c0_i32_0 = arith.constant 0 : i32
    return %arg1, %arg0, %c0_i32 : i32, i32, i32
  }
  func.func @transform_1(%arg0: i32, %arg1: i32) -> (i32, i32, i32) {
    %c0_i32 = arith.constant 0 : i32
    %c0_i32_0 = arith.constant 0 : i32
    %c0_i32_1 = arith.constant 0 : i32
    return %arg1, %c0_i32, %c0_i32_0 : i32, i32, i32
  }
  func.func @transform_2(%arg0: i32, %arg1: i32) -> (i32, i32) {
    %c0_i32 = arith.constant 0 : i32
    %c0_i32_0 = arith.constant 0 : i32
    return %arg0, %c0_i32 : i32, i32
  }
  func.func @transform_3(%arg0: i32, %arg1: i32) -> (i32, i32, i32) {
    %c0_i32 = arith.constant 0 : i32
    %c0_i32_0 = arith.constant 0 : i32
    return %arg1, %arg0, %c0_i32 : i32, i32, i32
  }
}

</mosaic_0001>

<bundles_post_ra>
// kernel: tpu_custom_call.1
= control target key start
LH: loop header
LB: loop body
LE: loop exit
PB: predicated region body
PF: predicated region fallthrough
CT: control target
= control target key end

     0   :  { %s1086_s0 = inlined_call_operand.hbm [shape: bf16[4,24,32], index: 0, kind: input, shape index: {}]   ;;  %s1087_s1 = inlined_call_operand.hbm [shape: bf16[4,24,32], index: 1, kind: input, shape index: {}]   ;;  %s1088_s2 = inlined_call_operand.hbm [shape: bf16[24,24], index: 2, kind: input, shape index: {}]   ;;  %s1089_s3 = inlined_call_operand.vmem [shape: f32[4,24,1], index: 3, kind: output, shape index: {}]  }
   0x1   :  { %1092 = sst [smem:[#allocation11_spill]] %s1088_s2 }
   0x2   :  { %8 = vsyncpa [#allocation3], 0 }
   0x3   :  { %10 = vsyncpa [#allocation3 + $0x1], 0 }
   0x4   :  { %11 = vsyncpa [#allocation5], 0 }
   0x5   :  { %13 = vsyncpa [#allocation5 + $0x1], 0  ;;  %s917_s12 = smov 0   ;;  %s919_s13 = smov 0  }
   0x6   :  { %s921_s14 = smov 0   ;;  %s923_s15 = smov 0  }
   0x7   :  { %s925_s16 = smov 0   ;;  %s927_s17 = smov 0  }
   0x8 LB: > { %s1090_s18 = sadd.s32 4294967295, %s892_s17   ;;  %p53_p0 = scmp.ne.s32.totalorder %s876_s13, %s872_s12  ;;  %s892_s17 = sphi %s927_s17, %s19_s17   ;;  %s888_s16 = sphi %s925_s16, %s1105_s16   ;;  %s884_s15 = sphi %s923_s15, %s1104_s15   ;;  %s880_s14 = sphi %s921_s14, %s1103_s14   ;;  %s876_s13 = sphi %s919_s13, %s1102_s13   ;;  %s872_s12 = sphi %s917_s12, %s1101_s12  }
   0x9   : > { %p949_p1 = scmp.eq.s32.totalorder %s1090_s18, 0  ;;  %p618_p2 = scmp.ge.s32.totalorder %s892_s17, 1 }
   0xa   : > { %p144_p3 = scmp.lt.s32.totalorder %s892_s17, 3  ;;  %s1095_s2 = sld [smem:[#allocation11_spill]] }
   0xb   : > { %p957_p4 = por %p949_p1, %p53_p0  ;;  %s894_s25 = smov [#allocation6]  }
   0xc   : > { %p964_p5 = pnand %p618_p2, %p144_p3  ;;  %s160_s26 = sshll.u32 %s894_s25, 4  ;;  %s161_s26 = int_to_ptr.vmem [resolvable:$true] %s160_s26 }
   0xd   : > { %s895_s27 = smov 64   ;;  %s896_s28 = smov 4  }
   0xe   : > { %p679_p6 = pneg %p964_p5  ;;  %s28_s29 = sadd.s32 1, %s888_s16 }
   0xf   : > { %p29_p8 = scmp.ge.s32.totalorder %s28_s29, 2  ;;  %s40_s30 = sadd.s32 1, %s880_s14 }
  0x10   : > { %s158_s23 = sshll.u32 %s1095_s2, 4  ;;  %p680_p7 = pnand %p679_p6, %p949_p1  ;;  %s159_s23 = int_to_ptr.hbm [resolvable:$true] %s158_s23 }
  0x11   : > { %p47_p9 = scmp.ne.s32.totalorder %s880_s14, %s876_s13  ;;  %p48_p10 = scmp.eq.s32.totalorder %s892_s17, 0 }
  0x12   : > { %682 = dma.hbm_to_vmem [thread:$0]  (!%p680_p7), %s159_s23, 192, %s161_s26, [#allocation5], %s895_s27, %s895_s27, %s896_s28  }
  0x13   : > { %s1107_s29 = smov (%p29_p8, %s28_s29), 0  ;;  %p49_p11 = por %p48_p10, %p47_p9 }
  0x14   : > { %1097 = sst [smem:[#allocation10_spill]] %s1107_s29  ;;  %p691_p12 = scmp.lt.s32.totalorder %s892_s17, 2 }
  0x15   : > { %s35_s4 = ssub.s32 %s888_s16, %s1107_s29  ;;  %s174_s5 = sand.u32 1, %s880_s14  }
  0x16   : > { %p38_p13 = scmp.eq.s32.totalorder %s35_s4, 0  ;;  %s665_s6 = smul.u32 24, %s174_s5 }
  0x17   : > { %p986_p0 = pnand %p691_p12, %p49_p11  ;;  %s666_s9 = smul.u32 24, %s888_s16 }
  0x18   : > { %s991_s8 = scalar_select %p38_p13, %s880_s14, %s40_s30  }
  0x19   : > { %s178_s10 = scalar_lea.vmem [#allocation2], %s665_s6  ;;  %s186_s22 = scalar_lea.hbm %s1086_s0, %s666_s9 }
  0x1a   : > { %s189_s11 = sshll.u32 %s178_s10, 4  ;;  %s187_s23 = sshll.u32 %s186_s22, 4  ;;  %s190_s11 = int_to_ptr.vmem [resolvable:$true] %s189_s11  ;;  %s188_s23 = int_to_ptr.hbm [resolvable:$true] %s187_s23 }
  0x1b   : > { %s199_s25 = sand.u32 1, %s892_s17   ;;  %s175_s26 = scalar_lea.sflag [#allocation3], %s174_s5 }
  0x1c   : > { %686 = dma.hbm_to_vmem [thread:$0]  (!%p986_p0), %s188_s23, 384, %s190_s11, %s175_s26, %s895_s27, %s895_s27, %s896_s28  }
  0x1d   : > { %s209_s18 = scalar_lea.hbm %s1087_s1, %s666_s9  ;;  %s203_s10 = scalar_lea.vmem [#allocation4], %s665_s6 }
  0x1e   : > { %s210_s2 = sshll.u32 %s209_s18, 4  ;;  %s212_s29 = sshll.u32 %s203_s10, 4  ;;  %s211_s2 = int_to_ptr.hbm [resolvable:$true] %s210_s2  ;;  %s213_s29 = int_to_ptr.vmem [resolvable:$true] %s212_s29 }
  0x1f   : > { %s200_s12 = scalar_lea.sflag [#allocation5], %s199_s25  ;;  %224 = sbr.rel (%p964_p5) target bundleno = 342 (0x156), region = 32 }
  0x20   : > { %689 = dma.hbm_to_vmem [thread:$0]  (!%p986_p0), %s211_s2, 384, %s213_s29, %s200_s12, %s895_s27, %s895_s27, %s896_s28  }
  0x21   : > { %s226_s5 = sand.u32 (!%p964_p5), 1, %s876_s13  }
  0x22   : > { %s669_s11 = smul.u32 (!%p964_p5), 24, %s226_s5  ;;  %s227_s21 = scalar_lea.sflag (!%p964_p5), [#allocation3], %s226_s5 }
  0x24   : > { %s1014_s9 = scalar_lea.vmem [#allocation2], %s669_s11 }
  0x25   : > { %859 = dma.done.wait (%p957_p4), %s227_s21, 384  }
  0x26   : > { %861 = vsyncadd (%p957_p4), %s227_s21, 4294966912  ;;  %s1099_s18 = sadd.s32 4294967295, %s892_s17   ;;  %s240_s27 = scalar_lea.vmem [#allocation4], %s669_s11 }
  0x27   : > { %s236_s6 = sand.u32 1, %s1099_s18  }
  0x28   : > { %s237_s2 = scalar_lea.sflag [#allocation5], %s236_s6 }
  0x29   : > { %863 = dma.done.wait (%p957_p4), %s237_s2, 384  }
  0x2a   : > { %865 = vsyncadd (%p957_p4), %s237_s2, 4294966912 }
  0x2b   : > { %867 = dma.done.wait (%p949_p1), [#allocation5], 192  }
  0x2c   : > { %869 = vsyncadd (%p949_p1), [#allocation5], 4294967104  ;;  %v304_v0 = vld [vmem:[%s240_s27 + $0x8] sm:$0xf]  ;;  %v307_v1 = vld [vmem:[%s240_s27 + $0x14] sm:$0xf] }
  0x2d   : > { %v327_v2 = vunpack.c.l.b16 %v304_v0  ;;  %v374_v3 = vunpack.c.l.b16 %v307_v1  ;;  %vm330_vm0 = vcmask 261120   ;;  %v655_v8 = vld [vmem:[%s240_s27] sm:$0xff]  ;;  %v656_v9 = vld [vmem:[%s240_s27 + $0xc] sm:$0xff]  ;;  %v298_v10 = vld [vmem:[%s1014_s9 + $0x8] sm:$0xf]  ;;  %vm422_vm2 = vcmask 195584  }
  0x2e   : > { %v338_v11 = vsel %vm330_vm0, %v655_v8, 0  ;;  %v301_v12 = vld [vmem:[%s1014_s9 + $0x14] sm:$0xf]  ;;  %v384_v13 = vsel %vm330_vm0, %v656_v9, 0  ;;  %v319_v14 = vunpack.c.l.b16 %v298_v10  ;;  %v653_v16 = vld [vmem:[%s1014_s9] sm:$0xff]  ;;  %v654_v18 = vld [vmem:[%s1014_s9 + $0xc] sm:$0xff] }
  0x2f   : > { %v329_v4 = vpack.c.b16 %v327_v2, %v327_v2  ;;  %v376_v5 = vpack.c.b16 %v374_v3, %v374_v3  ;;  %v366_v15 = vunpack.c.l.b16 %v301_v12  ;;  %v658_v20 = vld [vmem:[#allocation6] sm:$0xff]   ;;  %v310_v22 = vld [vmem:[#allocation6 + $0x8] sm:$0xf]  ;;  %s629_s19 = sshll.u32 %s884_s15, 1  ;;  %vm477_vm5 = vcmask 7168  }
  0x30   : > { %v321_v17 = vpack.c.b16 %v319_v14, %v319_v14  ;;  %v659_v21 = vunpack.c.l.bf16 %v658_v20  ;;  %v313_v24 = vunpack.c.l.bf16 %v310_v22  ;;  %v660_v38 = vunpack.c.h.bf16 %v658_v20  ;;  %p285_p1 = scmp.lt.s32.totalorder %s629_s19, 3 }
  0x31   : > { %v341_v6 = vsel %vm330_vm0, %v329_v4, 0  ;;  %v387_v7 = vsel %vm330_vm0, %v376_v5, 0  ;;  %v368_v19 = vpack.c.b16 %v366_v15, %v366_v15 }
  0x32   : > { %349 = vmatpush.bf16.xpose.msra.mxu0 %v341_v6  ;;  %661 = vmatpush.bf16.xpose.msra.mxu2 %v341_v6  ;;  %vm407_vm1 = vcmp.gt.f32.partialorder %v659_v21, 0.0  ;;  %vm409_vm3 = vcmp.gt.f32.partialorder %v313_v24, 0.0  ;;  %vm408_vm4 = vcmp.gt.f32.partialorder %v660_v38, 0.0  ;;  %s1109_s19 = smov (!%p285_p1, %s629_s19), 3 }
  0x33   : > { %395 = vmatpush.bf16.xpose.msra.mxu1 %v387_v7  ;;  %663 = vmatpush.bf16.xpose.msra.mxu3 %v387_v7  ;;  %s670_s20 = smul.u32 24, %s1109_s19 }
  0x35   : > { %s292_s29 = scalar_lea.vmem %s1089_s3, %s670_s20 }
  0x3a   : > { %350 = vmatpush.bf16.xpose.msra.mxu0 %v338_v11  ;;  %662 = vmatpush.bf16.xpose.msra.mxu2 %v338_v11 }
  0x3b   : > { %396 = vmatpush.bf16.xpose.msra.mxu1 %v384_v13  ;;  %664 = vmatpush.bf16.xpose.msra.mxu3 %v384_v13 }
  0x41   : > { %639 = vmatmul.msk.bf16.vlgmr.msra.gmra.mxu0 %vm330_vm0, %v653_v16  ;;  %640 = vmatmul.msk.bf16.vlgmr.msra.gmra.mxu2 %vm330_vm0, %v321_v17 }
  0x42   : > { %649 = vmatmul.msk.bf16.vlgmr.msra.gmra.mxu1 %vm330_vm0, %v654_v18  ;;  %650 = vmatmul.msk.bf16.vlgmr.msra.gmra.mxu3 %vm330_vm0, %v368_v19 }
  0xbe   : > { %v352_v23 = vpop.f32.mrf.mxu0 }
  0xbf   : > { %v398_v25 = vpop.f32.mrf.mxu1  ;;  %v416_v26 = vsel %vm407_vm1, %v352_v23, -inf  ;;  %v441_v29 = vmul.f32 %v659_v21, %v352_v23 }
  0xc0   : > { %v423_v27 = vsel %vm422_vm2, %v416_v26, -inf  ;;  %v444_v28 = vmul.f32 %v659_v21, %v398_v25  ;;  %v419_v50 = vsel %vm407_vm1, %v398_v25, -inf }
  0xc1   : > { %424 = vmax.xlane.f32.xlu0 %v423_v27  ;;  %v447_v36 = vsel %vm422_vm2, %v441_v29, 0.0  ;;  %v432_v53 = vsel %vm422_vm2, %v419_v50, -inf }
  0xc2   : > { %v456_v30 = vsel %vm422_vm2, %v444_v28, 0.0 }
  0xc3   : > { %457 = vadd.xlane.f32.xlu1 %v456_v30 }
  0xc4   : > { %v357_v31 = vpop.f32.mrf.mxu2 }
  0xc5   : > { %v403_v32 = vpop.f32.mrf.mxu3  ;;  %v418_v33 = vsel %vm409_vm3, %v357_v31, -inf  ;;  %v443_v34 = vmul.f32 %v357_v31, %v313_v24 }
  0xc6   : > { %v429_v35 = vsel %vm422_vm2, %v418_v33, -inf  ;;  %v446_v37 = vmul.f32 %v403_v32, %v313_v24  ;;  %v354_v39 = vpop.f32.mrf.mxu0  ;;  %v421_v55 = vsel %vm409_vm3, %v403_v32, -inf }
  0xc7   : > { %430 = vmax.xlane.f32.xlu2 %v429_v35  ;;  %v453_v40 = vsel %vm422_vm2, %v443_v34, 0.0  ;;  %v442_v41 = vmul.f32 %v660_v38, %v354_v39  ;;  %v417_v45 = vsel %vm408_vm4, %v354_v39, -inf  ;;  %v400_v46 = vpop.f32.mrf.mxu1  ;;  %v438_v56 = vsel %vm422_vm2, %v421_v55, -inf }
  0xc8   : > { %v462_v43 = vsel %vm422_vm2, %v446_v37, 0.0  ;;  %v445_v48 = vmul.f32 %v660_v38, %v400_v46  ;;  %v426_v49 = vsel %vm422_vm2, %v417_v45, -inf  ;;  %v420_v52 = vsel %vm408_vm4, %v400_v46, -inf }
  0xc9   : > { %448 = vadd.xlane.f32.xlu0 %v447_v36  ;;  %v450_v47 = vsel %vm422_vm2, %v442_v41, 0.0  ;;  %v435_v54 = vsel %vm422_vm2, %v420_v52, -inf }
  0xca   : > { %v459_v51 = vsel %vm422_vm2, %v445_v48, 0.0 }
  0xcb   : > { %454 = vadd.xlane.f32.xlu1 %v453_v40 }
  0xcc   : > { %v359_v42 = vpop.f32.mrf.mxu2 }
  0xcd   : > { %v405_v44 = vpop.f32.mrf.mxu3 }
  0xcf   : > { %463 = vadd.xlane.f32.xlu2 %v462_v43 }
  0xd1   : > { %451 = vadd.xlane.f32.xlu0 %v450_v47 }
  0xd3   : > { %427 = vmax.xlane.f32.xlu1 %v426_v49 }
  0xd7   : > { %460 = vadd.xlane.f32.xlu2 %v459_v51 }
  0xd9   : > { %433 = vmax.xlane.f32.xlu0 %v432_v53 }
  0xdb   : > { %436 = vmax.xlane.f32.xlu1 %v435_v54 }
  0xdf   : > { %439 = vmax.xlane.f32.xlu2 %v438_v56 }
 0x134   : > { %v425_v57 = vpop.xlane.xlu0 %424 }
 0x136   : > { %v458_v58 = vpop.xlane.xlu1 %457 }
 0x137   : > { %v468_v8 = vmul.f32 0.041666668, %v458_v58 }
 0x13a   : > { %v431_v59 = vpop.xlane.xlu2 %430 }
 0x13c   : > { %v449_v60 = vpop.xlane.xlu0 %448 }
 0x13d   : > { %v465_v61 = vmul.f32 0.041666668, %v449_v60 }
 0x13e   : > { %v455_v62 = vpop.xlane.xlu1 %454 }
 0x13f   : > { %v471_v63 = vsub.f32 %v425_v57, %v465_v61  ;;  %v467_v0 = vmul.f32 0.041666668, %v455_v62 }
 0x141   : > { %478 = vst.msk [vmem:[%s292_s29] sm:$0xff] %vm477_vm5, %v471_v63  ;;  %v473_v1 = vsub.f32 %v431_v59, %v467_v0 }
 0x142   : > { %v464_v2 = vpop.xlane.xlu2 %463 }
 0x143   : > { %480 = vst.msk [vmem:[%s292_s29 + $0x10] sm:$0xff] %vm477_vm5, %v473_v1  ;;  %v470_v14 = vmul.f32 0.041666668, %v464_v2 }
 0x144   : > { %v452_v3 = vpop.xlane.xlu0 %451 }
 0x145   : > { %v466_v4 = vmul.f32 0.041666668, %v452_v3 }
 0x146   : > { %v428_v5 = vpop.xlane.xlu1 %427 }
 0x147   : > { %v472_v6 = vsub.f32 %v428_v5, %v466_v4 }
 0x149   : > { %479 = vst.msk [vmem:[%s292_s29 + $0x8] sm:$0xff] %vm477_vm5, %v472_v6 }
 0x14a   : > { %v461_v7 = vpop.xlane.xlu2 %460 }
 0x14b   : > { %v469_v9 = vmul.f32 0.041666668, %v461_v7 }
 0x14c   : > { %v434_v10 = vpop.xlane.xlu0 %433 }
 0x14d   : > { %v474_v11 = vsub.f32 %v434_v10, %v468_v8 }
 0x14e   : > { %v437_v12 = vpop.xlane.xlu1 %436 }
 0x14f   : > { %481 = vst.msk [vmem:[%s292_s29 + $0x18] sm:$0xff] %vm477_vm5, %v474_v11  ;;  %v475_v13 = vsub.f32 %v437_v12, %v469_v9 }
 0x151   : > { %482 = vst.msk [vmem:[%s292_s29 + $0x20] sm:$0xff] %vm477_vm5, %v475_v13 }
 0x152   : > { %v440_v15 = vpop.xlane.xlu2 %439 }
 0x153   : > { %v476_v16 = vsub.f32 %v440_v15, %v470_v14 }
 0x155   : > { %483 = vst.msk [vmem:[%s292_s29 + $0x28] sm:$0xff] %vm477_vm5, %v476_v16 }
 0x156 PF: > { %s19_s17 = sadd.s32 1, %s892_s17   ;;  %s1100_s7 = sld [smem:[#allocation10_spill]] }
 0x157   : > { %p16_p2 = scmp.ge.s32.totalorder %s19_s17, 4   ;;  %s1101_s12 = smov %s876_s13 }
 0x158   : > { %s1102_s13 = smov %s880_s14  ;;  %s1103_s14 = smov %s991_s8 }
 0x159   : > { %s1104_s15 = smov %s888_s16  ;;  %18 = sbr.rel (!%p16_p2) target bundleno = 8 (0x8), region = 90 }
 0x15c   : > { %s1105_s16 = smov %s1100_s7 }
 0x15e   :  { %517 = vsyncpa [#allocation3], 1 }
 0x15f   :  { %519 = vsyncpa [#allocation3 + $0x1], 1 }
 0x160   :  { %520 = vsyncpa [#allocation5], 1 }
 0x161   :  { %522 = vsyncpa [#allocation5 + $0x1], 1 }

</bundles_post_ra>
